<compile_context>
chip_gen: v7x
topology: tpu7x:2x2x1
jax: 0.10.0
libtpu: 0.0.40
codegen_flags: <defaults>
</compile_context>

<pallas_src>
import jax
import jax.numpy as jnp
from jax.experimental import pallas as pl
from jax.experimental.pallas import tpu as pltpu


def _concat_grid_kernel(x_ref, g_ref, o_ref):
    # x_ref: (tB, C,        tR, 128)   input channels slab
    # g_ref: (1,  grid_dim, tR, 128)   precomputed coordinate-grid slab
    # o_ref: (tB, C+grid_dim, tR, 128)
    C = x_ref.shape[1]
    o_ref[:, :C, :, :] = x_ref[...]
    o_ref[:, C:, :, :] = jnp.broadcast_to(
        g_ref[...], (o_ref.shape[0],) + g_ref.shape[1:]
    )


def _round_up(x, m):
    return (x + m - 1) // m * m


def _largest_divisor_leq(n, cap):
    cap = min(cap, n)
    for d in range(cap, 0, -1):
        if n % d == 0:
            return d
    return 1


def _choose_tiling(B, rows, C, Cout, grid_dim, itemsize, min_sub,
                   budget_bytes=16 * 1024 * 1024):
    """Pick (tB, tR, rows_padded) so the double-buffered working set fits budget."""
    lane_bytes = 128 * itemsize

    # Row tile, assuming tB = 1 (x + g + out blocks, double-buffered).
    per_row = 2 * (C + Cout + grid_dim) * lane_bytes
    max_tr = max(min_sub, budget_bytes // per_row)
    if rows <= max_tr:
        tr = rows                       # full extent: no sublane-multiple needed
        rows_p = rows
    else:
        tr = (max_tr // min_sub) * min_sub
        rows_p = _round_up(rows, tr)

    # Batch blocking: amortize the per-step fixed overhead, stay within budget.
    fixed = 2 * grid_dim * tr * lane_bytes
    per_batch = 2 * (C + Cout) * tr * lane_bytes
    max_tb = max(1, (budget_bytes - fixed) // per_batch)
    tb = _largest_divisor_leq(B, max_tb)

    # v7x has 2 TensorCores: make sure there are >= 2 parallel grid steps.
    if (rows_p // tr) * (B // tb) < 2:
        if B >= 2:
            tb = _largest_divisor_leq(B, B // 2)
        elif rows_p % (2 * min_sub) == 0:
            tr = rows_p // 2            # clean split, no extra padding
        # else: degenerate tiny single-batch case, leave as a single step.
    return tb, tr, rows_p


def grid_forward(x, grid_type: str = "cartesian"):
    """Pallas equivalent of models/GFNO.py::grid.forward (twoD_grid). NCHW layout."""
    assert grid_type in ("cartesian", "symmetric"), "Invalid grid type"
    symmetric = grid_type == "symmetric"
    grid_dim = 1 if symmetric else 2

    B, C, H, W = x.shape
    Cout = C + grid_dim
    HW = H * W
    itemsize = jnp.dtype(x.dtype).itemsize
    min_sub = 8 * max(1, 4 // itemsize)          # (8,128) for f32, (16,128) for bf16
    rows = -(-HW // 128)                          # cdiv(HW, 128)

    tb, tr, rows_p = _choose_tiling(B, rows, C, Cout, grid_dim, itemsize, min_sub)
    HWp = rows_p * 128

    # ---- batch-invariant coordinate-grid channels (built once, trace time) ----
    gx = jnp.linspace(0.0, 1.0, H, dtype=jnp.float32).reshape(H, 1)  # varies along H
    gy = jnp.linspace(0.0, 1.0, W, dtype=jnp.float32).reshape(1, W)  # varies along W
    if symmetric:
        midx = 0.5
        midy = (W - 1) / (2.0 * (H - 1))   # H == 1 raises, same as the PyTorch module
        g = ((gx - midx) ** 2 + (gy - midy) ** 2).reshape(1, HW)
    else:
        g = jnp.stack(
            (jnp.broadcast_to(gx, (H, W)), jnp.broadcast_to(gy, (H, W))), axis=0
        ).reshape(grid_dim, HW)
    g = g.astype(x.dtype)

    # ---- dense (sublane, lane) layout: pad HW -> rows_p * 128 and go 4D ----
    x_flat = x.reshape(B, C, HW)
    if HWp != HW:
        x_flat = jnp.pad(x_flat, ((0, 0), (0, 0), (0, HWp - HW)))
        g = jnp.pad(g, ((0, 0), (0, HWp - HW)))
    x4 = x_flat.reshape(B, C, rows_p, 128)
    g4 = g.reshape(1, grid_dim, rows_p, 128)

    n_row_tiles = rows_p // tr
    n_batch_tiles = B // tb

    out4 = pl.pallas_call(
        _concat_grid_kernel,
        out_shape=jax.ShapeDtypeStruct((B, Cout, rows_p, 128), x.dtype),
        # Batch axis innermost: the grid-constant g block index is unchanged
        # across it, so its DMA is issued once per row tile and reused.
        grid=(n_row_tiles, n_batch_tiles),
        in_specs=[
            pl.BlockSpec((tb, C, tr, 128), lambda r, b: (b, 0, r, 0)),
            pl.BlockSpec((1, grid_dim, tr, 128), lambda r, b: (0, 0, r, 0)),
        ],
        out_specs=pl.BlockSpec((tb, Cout, tr, 128), lambda r, b: (b, 0, r, 0)),
        compiler_params=pltpu.CompilerParams(
            dimension_semantics=("parallel", "parallel"),
            vmem_limit_bytes=32 * 1024 * 1024,
        ),
    )(x4, g4)

    out = out4.reshape(B, Cout, HWp)
    if HWp != HW:
        out = out[:, :, :HW]
    return out.reshape(B, Cout, H, W)


def _reference(x, grid_type):
    # Pure-JAX reference mirroring the PyTorch module exactly.
    B, _, H, W = x.shape
    gx = jnp.linspace(0.0, 1.0, H, dtype=jnp.float32).reshape(1, 1, H, 1)
    gx = jnp.broadcast_to(gx, (B, 1, H, W))
    gy = jnp.linspace(0.0, 1.0, W, dtype=jnp.float32).reshape(1, 1, 1, W)
    gy = jnp.broadcast_to(gy, (B, 1, H, W))
    if grid_type == "cartesian":
        g = jnp.concatenate((gx, gy), axis=1)
    else:
        midx = 0.5
        midy = (W - 1) / (2.0 * (H - 1))
        g = (gx - midx) ** 2 + (gy - midy) ** 2
    return jnp.concatenate((x, g.astype(x.dtype)), axis=1)


if __name__ == "__main__":
    key = jax.random.PRNGKey(0)
    B, C, H, W = 2, 4, 16, 16
    x = jax.random.normal(key, (B, C, H, W), dtype=jnp.float32)

    ok = True
    for gt in ("cartesian", "symmetric"):
        out = grid_forward(x, gt)
        out = jax.block_until_ready(out)
        ref = _reference(x, gt)
        expected_channels = C + (2 if gt == "cartesian" else 1)
        assert out.shape == (B, expected_channels, H, W), out.shape
        if not jnp.allclose(out, ref, atol=1e-6, rtol=1e-6):
            ok = False

    if ok:
        print("KERNEL_OK")
</pallas_src>

<mosaic_0001>
module attributes {stable_mosaic.version = 11 : i64} {
  func.func @_concat_grid_kernel(%arg0: i32, %arg1: i32, %arg2: memref<1x4x2x128xf32, #tpu.memory_space<vmem>>, %arg3: memref<1x2x2x128xf32, #tpu.memory_space<vmem>>, %arg4: memref<1x6x2x128xf32, #tpu.memory_space<vmem>>) attributes {dimension_semantics = [#tpu.dimension_semantics<parallel>, #tpu.dimension_semantics<parallel>], iteration_bounds = array<i64: 1, 2>, scalar_prefetch = 0 : i64, scratch_operands = 0 : i64, tpu.core_type = #tpu.core_type<tc>, window_params = [{transform_indices = @transform_0, window_bounds = array<i64: 1, 4, 2, 128>}, {transform_indices = @transform_1, window_bounds = array<i64: 1, 2, 2, 128>}, {transform_indices = @transform_2, window_bounds = array<i64: 1, 6, 2, 128>}]} {
    %c0 = arith.constant 0 : index
    %c0_0 = arith.constant 0 : index
    %c0_1 = arith.constant 0 : index
    %c0_2 = arith.constant 0 : index
    %0 = vector.load %arg2[%c0, %c0_0, %c0_1, %c0_2] : memref<1x4x2x128xf32, #tpu.memory_space<vmem>>, vector<1x4x2x128xf32>
    %c0_3 = arith.constant 0 : index
    %c0_4 = arith.constant 0 : index
    %c0_5 = arith.constant 0 : index
    %c0_6 = arith.constant 0 : index
    %1 = vector.load %arg4[%c0_3, %c0_4, %c0_5, %c0_6] : memref<1x6x2x128xf32, #tpu.memory_space<vmem>>, vector<1x4x2x128xf32>
    tpu.vector_store %arg4[%c0_3, %c0_4, %c0_5, %c0_6], %0 {strides = array<i32>} : memref<1x6x2x128xf32, #tpu.memory_space<vmem>>, vector<1x4x2x128xf32>,
    %c0_7 = arith.constant 0 : index
    %c0_8 = arith.constant 0 : index
    %c0_9 = arith.constant 0 : index
    %c0_10 = arith.constant 0 : index
    %2 = vector.load %arg3[%c0_7, %c0_8, %c0_9, %c0_10] : memref<1x2x2x128xf32, #tpu.memory_space<vmem>>, vector<1x2x2x128xf32>
    %c0_11 = arith.constant 0 : index
    %c4 = arith.constant 4 : index
    %c0_12 = arith.constant 0 : index
    %c0_13 = arith.constant 0 : index
    %3 = vector.load %arg4[%c0_11, %c4, %c0_12, %c0_13] : memref<1x6x2x128xf32, #tpu.memory_space<vmem>>, vector<1x2x2x128xf32>
    tpu.vector_store %arg4[%c0_11, %c4, %c0_12, %c0_13], %2 {strides = array<i32>} : memref<1x6x2x128xf32, #tpu.memory_space<vmem>>, vector<1x2x2x128xf32>,
    return
  }
  func.func @transform_0(%arg0: i32, %arg1: i32) -> (i32, i32, i32, i32) {
    %c0_i32 = arith.constant 0 : i32
    %c0_i32_0 = arith.constant 0 : i32
    %c0_i32_1 = arith.constant 0 : i32
    return %arg1, %c0_i32, %arg0, %c0_i32_0 : i32, i32, i32, i32
  }
  func.func @transform_1(%arg0: i32, %arg1: i32) -> (i32, i32, i32, i32) {
    %c0_i32 = arith.constant 0 : i32
    %c0_i32_0 = arith.constant 0 : i32
    %c0_i32_1 = arith.constant 0 : i32
    %c0_i32_2 = arith.constant 0 : i32
    return %c0_i32, %c0_i32_0, %arg0, %c0_i32_1 : i32, i32, i32, i32
  }
  func.func @transform_2(%arg0: i32, %arg1: i32) -> (i32, i32, i32, i32) {
    %c0_i32 = arith.constant 0 : i32
    %c0_i32_0 = arith.constant 0 : i32
    %c0_i32_1 = arith.constant 0 : i32
    return %arg1, %c0_i32, %arg0, %c0_i32_0 : i32, i32, i32, i32
  }
}

</mosaic_0001>

<bundles_post_ra>
// kernel: tpu_custom_call.1
= control target key start
LH: loop header
LB: loop body
LE: loop exit
PB: predicated region body
PF: predicated region fallthrough
CT: control target
= control target key end

     0   :  { %7 = vsyncpa [#allocation3], 0  ;;  %s816_s0 = inlined_call_operand.hbm [shape: f32[2,4,2,128], index: 0, kind: input, shape index: {}]   ;;  %s817_s1 = inlined_call_operand.hbm [shape: f32[1,2,2,128], index: 1, kind: input, shape index: {}]   ;;  %s818_s2 = inlined_call_operand.hbm [shape: f32[2,6,2,128], index: 2, kind: output, shape index: {}]  }
   0x1   :  { %9 = vsyncpa [#allocation3 + $0x1], 0 }
   0x2   :  { %10 = vsyncpa [#allocation6], 0 }
   0x3   :  { %11 = vsyncpa [#allocation4], 0 }
   0x4   :  { %13 = vsyncpa [#allocation4 + $0x1], 0  ;;  %s590_s9 = smov 0   ;;  %s592_s10 = smov 0  }
   0x5   :  { %s594_s11 = smov 0   ;;  %s596_s12 = smov 0  }
   0x6   :  { %s598_s13 = smov 0   ;;  %s600_s14 = smov 0  }
   0x7 LB: > { %s326_s15 = sadd.s32 4294967295, %s566_s14   ;;  %s327_s16 = sadd.s32 4294967294, %s566_s14   ;;  %s566_s14 = sphi %s600_s14, %s19_s14   ;;  %s562_s13 = sphi %s598_s13, %s842_s13   ;;  %s558_s12 = sphi %s596_s12, %s841_s12   ;;  %s554_s11 = sphi %s594_s11, %s840_s11   ;;  %s550_s10 = sphi %s592_s10, %s839_s10   ;;  %s546_s9 = sphi %s590_s9, %s838_s9  }
   0x8   : > { %p53_p0 = scmp.ne.s32.totalorder %s550_s10, %s546_s9  ;;  %p624_p1 = scmp.eq.s32.totalorder %s326_s15, 0 }
   0x9   : > { %p628_p2 = scmp.eq.s32.totalorder %s326_s15, 1  ;;  %p111_p3 = scmp.eq.s32.totalorder %s327_s16, 1 }
   0xa   : > { %s823_s17 = scalar_select %p624_p1, 1, 0 }
   0xb   : > { %s824_s18 = scalar_select %p628_p2, 1, 0 }
   0xc   : > { %p634_p4 = por %p624_p1, %p53_p0  ;;  %p328_p5 = scmp.ge.s32.totalorder %s566_s14, 1 }
   0xd   : > { %p639_p6 = por %p111_p3, %p53_p0  ;;  %p118_p7 = scmp.lt.s32.totalorder %s566_s14, 3 }
   0xe   : > { %s825_s19 = scalar_select %p634_p4, 1, 0 }
   0xf   : > { %s826_s20 = scalar_select %p639_p6, 1, 0 }
  0x10   : > { %p644_p8 = pnand %p328_p5, %p118_p7  ;;  %s568_s22 = smov [#allocation5]  }
  0x11   : > { %s132_s23 = sshll.u32 %s568_s22, 4  ;;  %s28_s25 = sadd.s32 1, %s562_s13  ;;  %s133_s23 = int_to_ptr.vmem [resolvable:$true] %s132_s23 }
  0x12   : > { %s827_s21 = scalar_select %p644_p8, 1, 0 }
  0x13   : > { %p353_p9 = pneg %p644_p8  ;;  %s422_s28 = scalar_lea.hbm %s817_s1, 64 }
  0x14   : > { %p423_p12 = scmp.ne.s32.totalorder %s817_s1, %s422_s28  ;;  %p429_p5 = scmp.lt.u32.totalorder %s422_s28, %s817_s1 }
  0x15   : > { %p653_p11 = pnand %p353_p9, %p624_p1 }
  0x17   : > { %p424_p13 = pneg %p653_p11 }
  0x19   : > { %p425_p0 = pnand %p424_p13, %p423_p12 }
  0x1b   : > { %p426_p3 = pneg %p425_p0 }
  0x1d   : > { %p431_p7 = pnand %p429_p5, %p426_p3 }
  0x1f   : > { %434 = shalt.err (!%p431_p7)
}
  0x20   : > { %s435_s5 = scalar_lea.vmem %s133_s23, 64  ;;  %p443_p1 = scmp.lt.s32.totalorder %s133_s23, %s133_s23 }
  0x21   : > { %p436_p9 = scmp.ne.s32.totalorder %s133_s23, %s435_s5  ;;  %p444_p4 = scmp.lt.s32.totalorder %s435_s5, %s435_s5 }
  0x23   : > { %p438_p10 = pnand %p436_p9, %p424_p13  ;;  %p445_p8 = por %p444_p4, %p443_p1 }
  0x25   : > { %p439_p6 = pneg %p438_p10 }
  0x27   : > { %p446_p2 = pnand %p445_p8, %p439_p6 }
  0x29   : > { %449 = shalt.err (!%p446_p2)
}
  0x2a   : > { %s569_s6 = smov 32   ;;  %s570_s7 = smov 2  }
  0x2b   : > { %356 = dma.hbm_to_vmem [thread:$0]  (!%p653_p11), %s817_s1, 64, %s133_s23, [#allocation6], %s569_s6, %s569_s6, %s570_s7  }
  0x2c   : > { %p29_p1 = scmp.ge.s32.totalorder %s28_s25, 2  ;;  %s40_s16 = sadd.s32 1, %s554_s11 }
  0x2d   : > { %p47_p2 = scmp.ne.s32.totalorder %s554_s11, %s550_s10  ;;  %p48_p4 = scmp.eq.s32.totalorder %s566_s14, 0 }
  0x2e   : > { %s844_s25 = smov (%p29_p1, %s28_s25), 0  ;;  %p830_p8 = scmp.ne.s32.totalorder %s824_s18, 0 }
  0x2f   : > { %p683_p6 = por %p48_p4, %p47_p2  ;;  %s35_s26 = ssub.s32 %s562_s13, %s844_s25 }
  0x30   : > { %p689_p10 = por %p830_p8, %p47_p2  ;;  %p366_p12 = scmp.lt.s32.totalorder %s566_s14, 2 }
  0x31   : > { %p38_p11 = scmp.eq.s32.totalorder %s35_s26, 0  ;;  %s146_s23 = sand.u32 1, %s554_s11  }
  0x32   : > { %s331_s27 = sshll.u32 %s146_s23, 3  ;;  %s342_s29 = sshll.u32 %s562_s13, 7 }
  0x33   : > { %s698_s28 = scalar_select %p38_p11, %s554_s11, %s40_s16  }
  0x34   : > { %s704_s4 = scalar_lea.hbm %s816_s0, %s342_s29  ;;  %s150_s18 = scalar_lea.vmem [#allocation2], %s331_s27 }
  0x35   : > { %s158_s5 = sshll.u32 %s150_s18, 4  ;;  %p710_p13 = pnand %p366_p12, %p683_p6  ;;  %s706_s5 = int_to_ptr.vmem [resolvable:$true] %s158_s5 }
  0x36   : > { %s714_s15 = scalar_lea.sflag [#allocation3], %s146_s23  ;;  %s450_s16 = scalar_lea.hbm %s704_s4, 128 }
  0x37   : > { %p451_p0 = scmp.ne.s32.totalorder %s704_s4, %s450_s16  ;;  %p452_p3 = pneg %p710_p13 }
  0x38   : > { %s455_s22 = scalar_lea.hbm %s816_s0, 256  ;;  %p456_p9 = scmp.lt.u32.totalorder %s704_s4, %s816_s0 }
  0x39   : > { %p453_p5 = pnand %p452_p3, %p451_p0  ;;  %p457_p1 = scmp.lt.u32.totalorder %s455_s22, %s450_s16 }
  0x3a   : > { %p459_p4 = scmp.lt.u32.totalorder %s450_s16, %s704_s4 }
  0x3b   : > { %p454_p7 = pneg %p453_p5  ;;  %p458_p2 = por %p457_p1, %p456_p9 }
  0x3d   : > { %p460_p6 = por %p459_p4, %p458_p2 }
  0x3f   : > { %p461_p8 = pnand %p460_p6, %p454_p7 }
  0x41   : > { %464 = shalt.err (!%p461_p8)
}
  0x42   : > { %s465_s23 = scalar_lea.vmem %s706_s5, 128  ;;  %s571_s3 = smov [#allocation2]  }
  0x43   : > { %p466_p12 = scmp.ne.s32.totalorder %s706_s5, %s465_s23  ;;  %s470_s18 = sshll.u32 %s571_s3, 4  ;;  %s471_s18 = int_to_ptr.vmem [resolvable:$false] %s470_s18 }
  0x44   : > { %s472_s26 = scalar_lea.vmem %s471_s18, 256  ;;  %p473_p5 = scmp.lt.s32.totalorder %s706_s5, %s471_s18 }
  0x45   : > { %p468_p11 = pnand %p466_p12, %p452_p3  ;;  %p474_p9 = scmp.lt.s32.totalorder %s472_s26, %s465_s23 }
  0x47   : > { %p469_p0 = pneg %p468_p11  ;;  %p475_p1 = por %p474_p9, %p473_p5 }
  0x49   : > { %p476_p2 = pnand %p475_p1, %p469_p0 }
  0x4b   : > { %479 = shalt.err (!%p476_p2)
}
  0x4c   : > { %360 = dma.hbm_to_vmem [thread:$0]  (!%p710_p13), %s704_s4, 128, %s706_s5, %s714_s15, %s569_s6, %s569_s6, %s570_s7  }
  0x4d   : > { %p833_p3 = scmp.ne.s32.totalorder %s827_s21, 0 }
  0x4e   : > { %s748_s16 = sand.u32 (!%p833_p3), 1, %s550_s10   ;;  %p834_p7 = scmp.ne.s32.totalorder (!%p833_p3), %s825_s19, 0 }
  0x4f   : > { %170 = sbr.rel (%p833_p3) target bundleno = 117 (0x75), region = 28  ;;  %s335_s27 = sshll.u32 (!%p833_p3), %s748_s16, 3 }
  0x50   : > { %s173_s22 = scalar_lea.sflag (!%p833_p3), [#allocation3], %s748_s16  ;;  %s176_s29 = scalar_lea.vmem (!%p833_p3), [#allocation2], %s335_s27 }
  0x56   : > { %533 = dma.done.wait (%p834_p7), %s173_s22, 128  }
  0x57   : > { %535 = vsyncadd (%p834_p7), %s173_s22, 4294967168  ;;  %p835_p4 = scmp.ne.s32.totalorder %s823_s17, 0 }
  0x59   : > { %537 = dma.done.wait (%p835_p4), [#allocation6], 64  }
  0x5a   : > { %539 = vsyncadd (%p835_p4), [#allocation6], 4294967232  ;;  %s343_s21 = smul.u32 12, %s748_s16  ;;  %v201_v0 = vld [vmem:[%s176_s29] sm:$0xff]   ;;  %v209_v1 = vld [vmem:[#allocation5] sm:$0xf]  }
  0x5b   : > { %s344_s6 = smul.u32 192, %s558_s12  ;;  %s215_s17 = scalar_lea.sflag [#allocation4], %s748_s16 }
  0x5c   : > { %s200_s7 = scalar_lea.vmem [#allocation7], %s343_s21  ;;  %s572_s12 = smov [#allocation7]  }
  0x5d   : > { %s229_s4 = sshll.u32 %s200_s7, 4  ;;  %s767_s19 = scalar_lea.hbm %s818_s2, %s344_s6  ;;  %205 = vst [vmem:[%s200_s7] sm:$0xff] %v201_v0   ;;  %337 = vst [vmem:[%s200_s7 + $0x8] sm:$0xf] %v209_v1   ;;  %s762_s4 = int_to_ptr.vmem [resolvable:$true] %s229_s4 }
  0x5e   : > { %s480_s15 = scalar_lea.vmem %s762_s4, 192  ;;  %s484_s30 = sshll.u32 %s572_s12, 4  ;;  %s485_s30 = int_to_ptr.vmem [resolvable:$false] %s484_s30 }
  0x5f   : > { %p481_p13 = scmp.ne.s32.totalorder %s762_s4, %s480_s15  ;;  %s486_s23 = scalar_lea.vmem %s485_s30, 384 }
  0x60   : > { %p487_p12 = scmp.lt.s32.totalorder %s762_s4, %s485_s30  ;;  %p488_p11 = scmp.lt.s32.totalorder %s486_s23, %s480_s15 }
  0x61   : > { %p482_p6 = pnand %p481_p13, %p689_p10 }
  0x62   : > { %p489_p0 = por %p488_p11, %p487_p12 }
  0x63   : > { %p483_p8 = pneg %p482_p6 }
  0x65   : > { %p490_p5 = pnand %p489_p0, %p483_p8 }
  0x67   : > { %493 = shalt.err (!%p490_p5)
}
  0x68   : > { %s494_s3 = scalar_lea.hbm %s767_s19, 192  ;;  %s498_s27 = scalar_lea.hbm %s818_s2, 384 }
  0x69   : > { %p495_p9 = scmp.ne.s32.totalorder %s767_s19, %s494_s3  ;;  %p499_p3 = scmp.lt.u32.totalorder %s767_s19, %s818_s2 }
  0x6a   : > { %p500_p7 = scmp.lt.u32.totalorder %s498_s27, %s494_s3  ;;  %p502_p13 = scmp.lt.u32.totalorder %s494_s3, %s767_s19 }
  0x6b   : > { %p496_p1 = pnand %p495_p9, %p689_p10 }
  0x6c   : > { %p501_p4 = por %p500_p7, %p499_p3 }
  0x6d   : > { %p497_p2 = pneg %p496_p1 }
  0x6e   : > { %p503_p6 = por %p502_p13, %p501_p4 }
  0x70   : > { %p504_p8 = pnand %p503_p6, %p497_p2 }
  0x72   : > { %507 = shalt.err (!%p504_p8)
}
  0x73   : > { %s573_s21 = smov 32   ;;  %s574_s6 = smov 2  }
  0x74   : > { %351 = dma.vmem_to_hbm [thread:$0]  (%p689_p10), %s762_s4, 192, %s767_s19, %s215_s17, %s573_s21, %s573_s21, %s574_s6  }
  0x75 PF: > { %s244_s7 = sand.u32 1, %s546_s9   ;;  %p836_p12 = scmp.ne.s32.totalorder %s826_s20, 0 }
  0x76   : > { %p837_p11 = scmp.ge.s32.totalorder %s566_s14, 2  ;;  %s245_s5 = scalar_lea.sflag [#allocation4], %s244_s7 }
  0x78   : > { %p362_p0 = pnand %p837_p11, %p836_p12 }
  0x7a   : > { %541 = dma.done.wait (!%p362_p0), %s245_s5, 192  }
  0x7b   : > { %543 = vsyncadd (!%p362_p0), %s245_s5, 4294967104  ;;  %s19_s14 = sadd.s32 1, %s566_s14   ;;  %s838_s9 = smov %s550_s10 }
  0x7c   : > { %p16_p5 = scmp.ge.s32.totalorder %s19_s14, 4   ;;  %s839_s10 = smov %s554_s11 }
  0x7d   : > { %s840_s11 = smov %s698_s28  ;;  %s841_s12 = smov %s562_s13 }
  0x7e   : > { %s842_s13 = smov %s844_s25  ;;  %18 = sbr.rel (!%p16_p5) target bundleno = 7 (0x7), region = 79 }
  0x85   :  { %250 = vsyncpa [#allocation3], 1 }
  0x86   :  { %252 = vsyncpa [#allocation3 + $0x1], 1 }
  0x87   :  { %253 = vsyncpa [#allocation6], 1 }
  0x88   :  { %254 = vsyncpa [#allocation4], 1 }
  0x89   :  { %256 = vsyncpa [#allocation4 + $0x1], 1 }

</bundles_post_ra>
